<compile_context>
chip_gen: v7x
topology: tpu7x:2x2x1
jax: 0.10.0
libtpu: 0.0.40
codegen_flags: <defaults>
</compile_context>

<pallas_src>
import functools

import jax
import jax.numpy as jnp
from jax.experimental import pallas as pl
from jax.experimental.pallas import tpu as pltpu  # noqa: F401  (TPU backend)

EPS = 1e-5


def bn_add_kernel(x_ref, res_ref, gb_ref, o_ref, *, true_count):
    # x_ref, res_ref, o_ref: (C, L_pad) f32 (lane-padded with zeros)
    # gb_ref: (C, 2) f32  -- column 0 = gamma, column 1 = beta
    inv_count = 1.0 / true_count  # TRUE element count, not the padded width

    # --- stats pass: one-pass Σx / Σx² per channel (training-mode BN) ---
    # Zero padding contributes nothing to either sum.
    x = x_ref[...].astype(jnp.float32)
    mean = jnp.sum(x, axis=1, keepdims=True) * inv_count            # (C, 1)
    mean_sq = jnp.sum(x * x, axis=1, keepdims=True) * inv_count     # (C, 1)
    var = mean_sq - mean * mean                                      # biased var
    inv_std = jax.lax.rsqrt(var + EPS)                               # EUP op

    # Fold affine params into per-channel scale / shift.
    gamma = gb_ref[:, 0:1]
    beta = gb_ref[:, 1:2]
    scale = gamma * inv_std                                          # (C, 1)
    shift = beta - mean * scale                                      # (C, 1)

    # --- finish pass: re-read x / res from VMEM so the stats-pass value of x
    # does not stay pinned in vregs across the whole kernel ---
    o_ref[...] = (
        res_ref[...].astype(jnp.float32) + x_ref[...].astype(jnp.float32) * scale + shift
    ).astype(o_ref.dtype)


def batchnorm_add(x110, x103, gamma, beta):
    """x111 = BatchNorm2d(x110) (training-mode batch stats); return x103 + x111.

    x110, x103: (N, C, H, W) float32
    gamma, beta: (C,) float32
    """
    N, C, H, W = x110.shape
    L = N * H * W
    LP = ((L + 127) // 128) * 128  # lane-dense width (multiple of 128)

    # NCHW -> (C, N*H*W).  Free reshape for N == 1.
    x_cl = jnp.transpose(x110, (1, 0, 2, 3)).reshape(C, L)
    r_cl = jnp.transpose(x103, (1, 0, 2, 3)).reshape(C, L)
    pad = LP - L
    if pad:
        x_cl = jnp.pad(x_cl, ((0, 0), (0, pad)))
        r_cl = jnp.pad(r_cl, ((0, 0), (0, pad)))

    # Pack gamma/beta into one (C, 2) slab -> a single small DMA.
    gb = jnp.stack(
        [gamma.astype(jnp.float32), beta.astype(jnp.float32)], axis=1
    )  # (C, 2)

    kernel = functools.partial(bn_add_kernel, true_count=L)

    out_cl = pl.pallas_call(
        kernel,
        out_shape=jax.ShapeDtypeStruct((C, LP), x110.dtype),
        in_specs=[
            pl.BlockSpec((C, LP), lambda: (0, 0)),
            pl.BlockSpec((C, LP), lambda: (0, 0)),
            pl.BlockSpec((C, 2), lambda: (0, 0)),
        ],
        out_specs=pl.BlockSpec((C, LP), lambda: (0, 0)),
        # Residual tile and output have identical shape/dtype -> reuse the
        # buffer instead of allocating a fresh HBM output.
        input_output_aliases={1: 0},
    )(x_cl, r_cl, gb)

    # Strip lane padding, then (C, N*H*W) -> NCHW.
    out_cl = out_cl[:, :L]
    return jnp.transpose(out_cl.reshape(C, N, H, W), (1, 0, 2, 3))


if __name__ == "__main__":
    key = jax.random.PRNGKey(0)
    k1, k2 = jax.random.split(key)

    N, C, H, W = 1, 96, 14, 14
    x110 = jax.random.normal(k1, (N, C, H, W), dtype=jnp.float32)
    x103 = jax.random.normal(k2, (N, C, H, W), dtype=jnp.float32)

    # BatchNorm2d default parameter init: weight (gamma) = 1, bias (beta) = 0
    gamma = jnp.ones((C,), dtype=jnp.float32)
    beta = jnp.zeros((C,), dtype=jnp.float32)

    out = batchnorm_add(x110, x103, gamma, beta)
    jax.block_until_ready(out)

    # quick sanity check against a pure-JAX reference (training-mode BN,
    # biased variance) + residual add
    mean = jnp.mean(x110, axis=(0, 2, 3), keepdims=True)
    var = jnp.var(x110, axis=(0, 2, 3), keepdims=True)
    ref = (
        x103
        + (x110 - mean) / jnp.sqrt(var + EPS) * gamma.reshape(1, C, 1, 1)
        + beta.reshape(1, C, 1, 1)
    )
    assert out.shape == (N, C, H, W)
    assert jnp.max(jnp.abs(out - ref)) < 1e-4

    print("KERNEL_OK")
</pallas_src>

<mosaic_0001>
module attributes {stable_mosaic.version = 11 : i64} {
  func.func @bn_add_kernel(%arg0: memref<96x256xf32, #tpu.memory_space<vmem>>, %arg1: memref<96x256xf32, #tpu.memory_space<vmem>>, %arg2: memref<96x2xf32, #tpu.memory_space<vmem>>, %arg3: memref<96x256xf32, #tpu.memory_space<vmem>>) attributes {dimension_semantics = [], scalar_prefetch = 0 : i64, scratch_operands = 0 : i64, tpu.core_type = #tpu.core_type<tc>} {
    %c0 = arith.constant 0 : index
    %c0_0 = arith.constant 0 : index
    %0 = vector.load %arg0[%c0, %c0_0] : memref<96x256xf32, #tpu.memory_space<vmem>>, vector<96x256xf32>
    %cst = arith.constant dense<0.000000e+00> : vector<96xf32>
    %1 = vector.multi_reduction <add>, %0, %cst [1] : vector<96x256xf32> to vector<96xf32>
    %2 = vector.shape_cast %1 : vector<96xf32> to vector<96x1xf32>
    %cst_1 = arith.constant 0.00510204071 : f32
    %3 = vector.broadcast %cst_1 : f32 to vector<96x1xf32>
    %4 = arith.mulf %2, %3 : vector<96x1xf32>
    %5 = arith.mulf %0, %0 : vector<96x256xf32>
    %cst_2 = arith.constant dense<0.000000e+00> : vector<96xf32>
    %6 = vector.multi_reduction <add>, %5, %cst_2 [1] : vector<96x256xf32> to vector<96xf32>
    %7 = vector.shape_cast %6 : vector<96xf32> to vector<96x1xf32>
    %cst_3 = arith.constant 0.00510204071 : f32
    %8 = vector.broadcast %cst_3 : f32 to vector<96x1xf32>
    %9 = arith.mulf %7, %8 : vector<96x1xf32>
    %10 = arith.mulf %4, %4 : vector<96x1xf32>
    %11 = arith.subf %9, %10 : vector<96x1xf32>
    %cst_4 = arith.constant 9.99999974E-6 : f32
    %12 = vector.broadcast %cst_4 : f32 to vector<96x1xf32>
    %13 = arith.addf %11, %12 : vector<96x1xf32>
    %14 = math.rsqrt %13 : vector<96x1xf32>
    %c0_5 = arith.constant 0 : index
    %c0_6 = arith.constant 0 : index
    %15 = vector.load %arg2[%c0_5, %c0_6] : memref<96x2xf32, #tpu.memory_space<vmem>>, vector<96x1xf32>
    %c0_7 = arith.constant 0 : index
    %c1 = arith.constant 1 : index
    %16 = vector.load %arg2[%c0_7, %c1] : memref<96x2xf32, #tpu.memory_space<vmem>>, vector<96x1xf32>
    %17 = arith.mulf %15, %14 : vector<96x1xf32>
    %18 = arith.mulf %4, %17 : vector<96x1xf32>
    %19 = arith.subf %16, %18 : vector<96x1xf32>
    %c0_8 = arith.constant 0 : index
    %c0_9 = arith.constant 0 : index
    %20 = vector.load %arg1[%c0_8, %c0_9] : memref<96x256xf32, #tpu.memory_space<vmem>>, vector<96x256xf32>
    %c0_10 = arith.constant 0 : index
    %c0_11 = arith.constant 0 : index
    %21 = vector.load %arg0[%c0_10, %c0_11] : memref<96x256xf32, #tpu.memory_space<vmem>>, vector<96x256xf32>
    %22 = vector.broadcast %17 : vector<96x1xf32> to vector<96x256xf32>
    %23 = arith.mulf %21, %22 : vector<96x256xf32>
    %24 = arith.addf %20, %23 : vector<96x256xf32>
    %25 = vector.broadcast %19 : vector<96x1xf32> to vector<96x256xf32>
    %26 = arith.addf %24, %25 : vector<96x256xf32>
    %c0_12 = arith.constant 0 : index
    %c0_13 = arith.constant 0 : index
    %27 = vector.load %arg3[%c0_12, %c0_13] : memref<96x256xf32, #tpu.memory_space<vmem>>, vector<96x256xf32>
    tpu.vector_store %arg3[%c0_12, %c0_13], %26 {strides = array<i32>} : memref<96x256xf32, #tpu.memory_space<vmem>>, vector<96x256xf32>,
    return
  }
}

</mosaic_0001>

<bundles_post_ra>
// kernel: tpu_custom_call.1
= control target key start
LH: loop header
LB: loop body
LE: loop exit
PB: predicated region body
PF: predicated region fallthrough
CT: control target
= control target key end

     0   :  { %8 = vsyncpa [#allocation3], 0  ;;  %s1113_s0 = inlined_call_operand.vmem [shape: f32[96,256], index: 0, kind: input, shape index: {}]   ;;  %s1114_s1 = inlined_call_operand.hbm [shape: f32[96,256], index: 1, kind: input, shape index: {}, may-alias: {1,3}]   ;;  %s1115_s2 = inlined_call_operand.vmem [shape: f32[96,2], index: 2, kind: input, shape index: {}]   ;;  %s1116_s3 = inlined_call_operand.hbm [shape: f32[96,256], index: 3, kind: output, shape index: {}, may-alias: {1,3}]  }
   0x1   :  { %9 = vsyncpa [#allocation4], 0  ;;  %s657_s12 = smov [#allocation2]   ;;  %s609_s16 = scalar_lea.hbm %s1114_s1, 3072 }
   0x2   :  { %s17_s13 = sshll.u32 %s657_s12, 4  ;;  %p610_p0 = scmp.ne.s32.totalorder %s1114_s1, %s609_s16  ;;  %s18_s13 = int_to_ptr.vmem [resolvable:$true] %s17_s13 }
   0x3   :  { %p613_p1 = scmp.lt.u32.totalorder %s609_s16, %s1114_s1 }
   0x5   :  { %p615_p2 = pnand %p613_p1, %p610_p0 }
   0x7   :  { %618 = shalt.err (!%p615_p2)
}
   0x8   :  { %s619_s21 = scalar_lea.vmem %s18_s13, 3072  ;;  %p624_p4 = scmp.lt.s32.totalorder %s18_s13, %s18_s13 }
   0x9   :  { %p620_p3 = scmp.ne.s32.totalorder %s18_s13, %s619_s21  ;;  %p625_p5 = scmp.lt.s32.totalorder %s619_s21, %s619_s21 }
   0xb   :  { %p626_p6 = por %p625_p5, %p624_p4 }
   0xd   :  { %p627_p7 = pnand %p626_p6, %p620_p3 }
   0xf   :  { %630 = shalt.err (!%p627_p7)
}
  0x10   :  { %s658_s22 = smov 256   ;;  %s659_s23 = smov 16  }
  0x11   :  { %23 = dma.hbm_to_vmem [thread:$0]  %s1114_s1, 3072, %s18_s13, [#allocation3], %s658_s22, %s658_s22, %s659_s23  }
  0x12   :  { %653 = dma.done.wait [#allocation3], 3072  }
  0x13   :  { %654 = vsyncadd [#allocation3], 4294964224  ;;  %v702_v0 = vld [vmem:[%s1113_s0 + $0x20] sm:$0xff]  ;;  %v707_v1 = vld [vmem:[%s1113_s0 + $0x28] sm:$0xff]  ;;  %s661_s27 = smov 1  }
  0x14   :  { %v712_v2 = vld [vmem:[%s1113_s0] sm:$0xff]  ;;  %v59_v3 = vadd.f32 %v707_v1, %v702_v0  ;;  %v719_v4 = vld [vmem:[%s1113_s0 + $0x8] sm:$0xff]  ;;  %v724_v5 = vld [vmem:[%s1113_s0 + $0x30] sm:$0xff]  ;;  %v105_v44 = vmul.f32 %v702_v0, %v702_v0  ;;  %v106_v45 = vmul.f32 %v707_v1, %v707_v1 }
  0x15   :  { %v729_v6 = vld [vmem:[%s1113_s0 + $0x38] sm:$0xff]  ;;  %v53_v7 = vadd.f32 %v719_v4, %v712_v2  ;;  %v736_v8 = vld [vmem:[%s1113_s0 + $0x10] sm:$0xff]  ;;  %v760_v14 = vld [vmem:[%s1113_s0 + $0x40] sm:$0xff]  ;;  %v101_v38 = vmul.f32 %v712_v2, %v712_v2  ;;  %v102_v39 = vmul.f32 %v719_v4, %v719_v4  ;;  %v107_v41 = vmul.f32 %v724_v5, %v724_v5 }
  0x16   :  { %v741_v9 = vld [vmem:[%s1113_s0 + $0x18] sm:$0xff]  ;;  %60 = vadd.xlane.f32.xlu1 %v59_v3  ;;  %v62_v10 = vadd.f32 %v729_v6, %v724_v5  ;;  %v750_v12 = vld [vmem:[%s1113_s0 + $0x50] sm:$0xff]  ;;  %v765_v15 = vld [vmem:[%s1113_s0 + $0x48] sm:$0xff]  ;;  %v103_v35 = vmul.f32 %v736_v8, %v736_v8  ;;  %v108_v42 = vmul.f32 %v729_v6, %v729_v6  ;;  %v131_v49 = vadd.f32 %v106_v45, %v105_v44 }
  0x17   :  { %54 = vadd.xlane.f32.xlu0 %v53_v7  ;;  %v56_v11 = vadd.f32 %v741_v9, %v736_v8  ;;  %v755_v13 = vld [vmem:[%s1113_s0 + $0x58] sm:$0xff]  ;;  %v65_v17 = vadd.f32 %v765_v15, %v760_v14  ;;  %v774_v18 = vld [vmem:[%s1113_s0 + $0x70] sm:$0xff]  ;;  %v784_v20 = vld [vmem:[%s1113_s0 + $0x60] sm:$0xff]  ;;  %v104_v36 = vmul.f32 %v741_v9, %v741_v9  ;;  %v125_v43 = vadd.f32 %v102_v39, %v101_v38 }
  0x18   :  { %v68_v16 = vadd.f32 %v755_v13, %v750_v12  ;;  %v779_v19 = vld [vmem:[%s1113_s0 + $0x78] sm:$0xff]  ;;  %v789_v21 = vld [vmem:[%s1113_s0 + $0x68] sm:$0xff]  ;;  %v798_v24 = vld [vmem:[%s1113_s0 + $0x90] sm:$0xff]  ;;  %v134_v46 = vadd.f32 %v108_v42, %v107_v41  ;;  %v111_v47 = vmul.f32 %v750_v12, %v750_v12  ;;  %v112_v48 = vmul.f32 %v755_v13, %v755_v13 }
  0x19   :  { %v74_v22 = vadd.f32 %v779_v19, %v774_v18  ;;  %v71_v23 = vadd.f32 %v789_v21, %v784_v20  ;;  %v803_v25 = vld [vmem:[%s1113_s0 + $0x98] sm:$0xff]  ;;  %v808_v26 = vld [vmem:[%s1113_s0 + $0x80] sm:$0xff]  ;;  %v813_v27 = vld [vmem:[%s1113_s0 + $0x88] sm:$0xff]  ;;  %v128_v40 = vadd.f32 %v104_v36, %v103_v35  ;;  %v109_v50 = vmul.f32 %v760_v14, %v760_v14 }
  0x1a   :  { %63 = vadd.xlane.f32.xlu1 %v62_v10  ;;  %v80_v28 = vadd.f32 %v803_v25, %v798_v24  ;;  %v77_v29 = vadd.f32 %v813_v27, %v808_v26  ;;  %v822_v30 = vld [vmem:[%s1113_s0 + $0xb0] sm:$0xff]  ;;  %v827_v31 = vld [vmem:[%s1113_s0 + $0xb8] sm:$0xff]  ;;  %v832_v32 = vld [vmem:[%s1113_s0 + $0xa0] sm:$0xff]  ;;  %v110_v51 = vmul.f32 %v765_v15, %v765_v15  ;;  %v140_v52 = vadd.f32 %v112_v48, %v111_v47 }
  0x1b   :  { %57 = vadd.xlane.f32.xlu0 %v56_v11  ;;  %v837_v33 = vld [vmem:[%s1113_s0 + $0xa8] sm:$0xff]  ;;  %v86_v34 = vadd.f32 %v827_v31, %v822_v30  ;;  %v115_v53 = vmul.f32 %v774_v18, %v774_v18  ;;  %v116_v54 = vmul.f32 %v779_v19, %v779_v19  ;;  %v113_v56 = vmul.f32 %v784_v20, %v784_v20 }
  0x1c   :  { %v83_v37 = vadd.f32 %v837_v33, %v832_v32  ;;  %v137_v55 = vadd.f32 %v110_v51, %v109_v50  ;;  %v114_v57 = vmul.f32 %v789_v21, %v789_v21  ;;  %v119_v59 = vmul.f32 %v798_v24, %v798_v24 }
  0x1d   :  { %v146_v58 = vadd.f32 %v116_v54, %v115_v53  ;;  %v120_v60 = vmul.f32 %v803_v25, %v803_v25  ;;  %v117_v62 = vmul.f32 %v808_v26, %v808_v26  ;;  %v118_v63 = vmul.f32 %v813_v27, %v813_v27 }
  0x1e   :  { %69 = vadd.xlane.f32.xlu1 %v68_v16  ;;  %v143_v61 = vadd.f32 %v114_v57, %v113_v56  ;;  %v123_v7 = vmul.f32 %v822_v30, %v822_v30  ;;  %v124_v10 = vmul.f32 %v827_v31, %v827_v31  ;;  %v121_v16 = vmul.f32 %v832_v32, %v832_v32 }
  0x1f   :  { %66 = vadd.xlane.f32.xlu0 %v65_v17  ;;  %v152_v3 = vadd.f32 %v120_v60, %v119_v59  ;;  %v149_v11 = vadd.f32 %v118_v63, %v117_v62  ;;  %v122_v17 = vmul.f32 %v837_v33, %v837_v33 }
  0x22   :  { %75 = vadd.xlane.f32.xlu1 %v74_v22  ;;  %v158_v22 = vadd.f32 %v124_v10, %v123_v7 }
  0x23   :  { %72 = vadd.xlane.f32.xlu0 %v71_v23  ;;  %v155_v23 = vadd.f32 %v122_v17, %v121_v16 }
  0x26   :  { %81 = vadd.xlane.f32.xlu1 %v80_v28  ;;  %v660_v28 = vmov 0  }
  0x27   :  { %78 = vadd.xlane.f32.xlu0 %v77_v29  ;;  %582 = vset.pattern.permute.xlu1 %v660_v28 }
  0x28   :  { %581 = vset.pattern.permute.xlu0 %v660_v28 }
  0x2a   :  { %87 = vadd.xlane.f32.xlu1 %v86_v34 }
  0x2b   :  { %84 = vadd.xlane.f32.xlu0 %v83_v37 }
  0x2e   :  { %129 = vadd.xlane.f32.xlu1 %v128_v40 }
  0x2f   :  { %126 = vadd.xlane.f32.xlu0 %v125_v43 }
  0x32   :  { %135 = vadd.xlane.f32.xlu1 %v134_v46 }
  0x33   :  { %132 = vadd.xlane.f32.xlu0 %v131_v49 }
  0x36   :  { %141 = vadd.xlane.f32.xlu1 %v140_v52 }
  0x37   :  { %138 = vadd.xlane.f32.xlu0 %v137_v55 }
  0x3a   :  { %147 = vadd.xlane.f32.xlu1 %v146_v58 }
  0x3b   :  { %144 = vadd.xlane.f32.xlu0 %v143_v61 }
  0x3e   :  { %153 = vadd.xlane.f32.xlu1 %v152_v3 }
  0x3f   :  { %150 = vadd.xlane.f32.xlu0 %v149_v11 }
  0x42   :  { %159 = vadd.xlane.f32.xlu1 %v158_v22 }
  0x43   :  { %156 = vadd.xlane.f32.xlu0 %v155_v23 }
  0xa3   :  { %v61_v29 = vpop.xlane.xlu1 %60 }
  0xa4   :  { %v55_v34 = vpop.xlane.xlu0 %54  ;;  %v901_v52 = vmul.f32 0.0051020407, %v61_v29 }
  0xa5   :  { %v895_v46 = vmul.f32 0.0051020407, %v55_v34 }
  0xa6   :  { %v175_v63 = vmul.f32 %v901_v52, %v901_v52 }
  0xa7   :  { %v64_v35 = vpop.xlane.xlu1 %63  ;;  %v173_v53 = vmul.f32 %v895_v46, %v895_v46 }
  0xa8   :  { %v58_v36 = vpop.xlane.xlu0 %57  ;;  %v897_v48 = vmul.f32 0.0051020407, %v64_v35 }
  0xa9   :  { %v891_v44 = vmul.f32 0.0051020407, %v58_v36 }
  0xaa   :  { %v176_v58 = vmul.f32 %v897_v48, %v897_v48 }
  0xab   :  { %v70_v37 = vpop.xlane.xlu1 %69  ;;  %v174_v49 = vmul.f32 %v891_v44, %v891_v44 }
  0xac   :  { %v67_v38 = vpop.xlane.xlu0 %66  ;;  %v907_v59 = vmul.f32 0.0051020407, %v70_v37 }
  0xad   :  { %v911_v3 = vmul.f32 0.0051020407, %v67_v38 }
  0xae   :  { %v178_v22 = vmul.f32 %v907_v59, %v907_v59 }
  0xaf   :  { %v76_v39 = vpop.xlane.xlu1 %75  ;;  %v177_v35 = vmul.f32 %v911_v3, %v911_v3 }
  0xb0   :  { %v73_v40 = vpop.xlane.xlu0 %72  ;;  %v915_v23 = vmul.f32 0.0051020407, %v76_v39 }
  0xb1   :  { %v919_v36 = vmul.f32 0.0051020407, %v73_v40 }
  0xb2   :  { %v180_v39 = vmul.f32 %v915_v23, %v915_v23 }
  0xb3   :  { %v82_v41 = vpop.xlane.xlu1 %81  ;;  %v179_v40 = vmul.f32 %v919_v36, %v919_v36 }
  0xb4   :  { %v79_v42 = vpop.xlane.xlu0 %78 }
  0xb7   :  { %v88_v43 = vpop.xlane.xlu1 %87 }
  0xb8   :  { %v893_v45 = vpop.xlane.xlu0 %84 }
  0xbb   :  { %v130_v47 = vpop.xlane.xlu1 %129 }
  0xbc   :  { %v162_v50 = vmul.f32 0.0051020407, %v130_v47  ;;  %v127_v51 = vpop.xlane.xlu0 %126 }
  0xbd   :  { %v161_v54 = vmul.f32 0.0051020407, %v127_v51 }
  0xbe   :  { %v186_v55 = vsub.f32 %v162_v50, %v174_v49  ;;  %v921_v49 = vmul.f32 0.0051020407, %v82_v41  ;;  %v932_v41 = vld [vmem:[%s1115_s2 + $0x8] sm:$0xff] }
  0xbf   :  { %v185_v56 = vsub.f32 %v161_v54, %v173_v53  ;;  %v136_v57 = vpop.xlane.xlu1 %135  ;;  %v925_v53 = vmul.f32 0.0051020407, %v79_v42 }
  0xc0   :  { %v198_v60 = vadd.f32 1e-05, %v186_v55  ;;  %v164_v61 = vmul.f32 0.0051020407, %v136_v57  ;;  %v133_v62 = vpop.xlane.xlu0 %132 }
  0xc1   :  { %v197_v7 = vadd.f32 1e-05, %v185_v56  ;;  %v163_v10 = vmul.f32 0.0051020407, %v133_v62 }
  0xc2   :  { %585 = vrsqrt.f32 %v198_v60  ;;  %v188_v11 = vsub.f32 %v164_v61, %v176_v58  ;;  %v182_v61 = vmul.f32 %v921_v49, %v921_v49 }
  0xc3   :  { %587 = vrsqrt.f32 %v197_v7  ;;  %v187_v16 = vsub.f32 %v163_v10, %v175_v63  ;;  %v142_v17 = vpop.xlane.xlu1 %141  ;;  %v939_v63 = vld [vmem:[%s1115_s2] sm:$0xff]  ;;  %v181_v10 = vmul.f32 %v925_v53, %v925_v53 }
  0xc4   :  { %v200_v28 = vadd.f32 1e-05, %v188_v11  ;;  %v166_v29 = vmul.f32 0.0051020407, %v142_v17  ;;  %v139_v34 = vpop.xlane.xlu0 %138  ;;  %v943_v11 = vmul.f32 0.0051020407, %v88_v43 }
  0xc5   :  { %v199_v37 = vadd.f32 1e-05, %v187_v16  ;;  %v165_v38 = vmul.f32 0.0051020407, %v139_v34 }
  0xc6   :  { %589 = vrsqrt.f32 %v200_v28  ;;  %v190_v47 = vsub.f32 %v166_v29, %v178_v22  ;;  %v946_v29 = vmul.f32 0.0051020407, %v893_v45  ;;  %v959_v45 = vld [vmem:[%s1115_s2 + $0x10] sm:$0xff] }
  0xc7   :  { %591 = vrsqrt.f32 %v199_v37  ;;  %v189_v50 = vsub.f32 %v165_v38, %v177_v35  ;;  %v148_v51 = vpop.xlane.xlu1 %147 }
  0xc8   :  { %v202_v54 = vadd.f32 1e-05, %v190_v47  ;;  %v168_v55 = vmul.f32 0.0051020407, %v148_v51  ;;  %v145_v56 = vpop.xlane.xlu0 %144 }
  0xc9   :  { %v201_v57 = vadd.f32 1e-05, %v189_v50  ;;  %v167_v58 = vmul.f32 0.0051020407, %v145_v56 }
  0xca   :  { %593 = vrsqrt.f32 %v202_v54  ;;  %v192_v60 = vsub.f32 %v168_v55, %v180_v39  ;;  %v184_v54 = vmul.f32 %v943_v11, %v943_v11 }
  0xcb   :  { %595 = vrsqrt.f32 %v201_v57  ;;  %v191_v42 = vsub.f32 %v167_v58, %v179_v40  ;;  %v154_v62 = vpop.xlane.xlu1 %153 }
  0xcc   :  { %v586_v7 = vpop.eup %585  ;;  %v204_v16 = vadd.f32 1e-05, %v192_v60  ;;  %v170_v17 = vmul.f32 0.0051020407, %v154_v62  ;;  %v151_v22 = vpop.xlane.xlu0 %150  ;;  %v183_v60 = vmul.f32 %v946_v29, %v946_v29 }
  0xcd   :  { %v588_v28 = vpop.eup %587  ;;  %v203_v34 = vadd.f32 1e-05, %v191_v42  ;;  %v169_v35 = vmul.f32 0.0051020407, %v151_v22  ;;  %v949_v37 = vmul.f32 %v586_v7, %v932_v41  ;;  %v971_v42 = vld [vmem:[%s1115_s2 + $0x18] sm:$0xff] }
  0xce   :  { %597 = vrsqrt.f32 %v204_v16  ;;  %v194_v38 = vsub.f32 %v170_v17, %v182_v61  ;;  %v952_v47 = vmul.f32 %v588_v28, %v939_v63 }
  0xcf   :  { %599 = vrsqrt.f32 %v203_v34  ;;  %v193_v43 = vsub.f32 %v169_v35, %v181_v10  ;;  %v160_v50 = vpop.xlane.xlu1 %159  ;;  %v246_v51 = vmul.f32 %v949_v37, %v891_v44  ;;  %v978_v10 = vld [vmem:[%s1115_s2 + $0x20] sm:$0xff] }
  0xd0   :  { %v590_v39 = vpop.eup %589  ;;  %v206_v55 = vadd.f32 1e-05, %v194_v38  ;;  %v172_v56 = vmul.f32 0.0051020407, %v160_v50  ;;  %v157_v40 = vpop.xlane.xlu0 %156  ;;  %v245_v57 = vmul.f32 %v952_v47, %v895_v46  ;;  %v985_v38 = vld [vmem:[%s1115_s2 + $0x28] sm:$0xff]  ;;  %v992_v50 = vld [vmem:[%s1115_s2 + $0x30] sm:$0xff] }
  0xd1   :  { %v592_v58 = vpop.eup %591  ;;  %v205_v44 = vadd.f32 1e-05, %v193_v43  ;;  %v171_v61 = vmul.f32 0.0051020407, %v157_v40  ;;  %271 = vrot.lane.b32.xlu1 %v246_v51, %s661_s27  ;;  %v236_v28 = vmul.f32 %v590_v39, %v971_v42 }
  0xd2   :  { %601 = vrsqrt.f32 %v206_v55  ;;  %v196_v62 = vsub.f32 %v172_v56, %v184_v54  ;;  %269 = vrot.lane.b32.xlu0 %v245_v57, %s661_s27  ;;  %v235_v46 = vmul.f32 %v592_v58, %v959_v45  ;;  %v1000_v56 = vld [vmem:[%s1115_s2 + $0x38] sm:$0xff] }
  0xd3   :  { %603 = vrsqrt.f32 %v205_v44  ;;  %v195_v7 = vsub.f32 %v171_v61, %v183_v60  ;;  %v248_v51 = vmul.f32 %v236_v28, %v897_v48  ;;  %v1008_v48 = vld [vmem:[%s1115_s2 + $0x40] sm:$0xff]  ;;  %v1016_v61 = vld [vmem:[%s1115_s2 + $0x48] sm:$0xff] }
  0xd4   :  { %v594_v16 = vpop.eup %593  ;;  %v208_v17 = vadd.f32 1e-05, %v196_v62  ;;  %v247_v22 = vmul.f32 %v235_v46, %v901_v52 }
  0xd5   :  { %v596_v34 = vpop.eup %595  ;;  %v207_v35 = vadd.f32 1e-05, %v195_v7  ;;  %v238_v54 = vmul.f32 %v594_v16, %v985_v38 }
  0xd6   :  { %605 = vrsqrt.f32 %v208_v17  ;;  %273 = vrot.lane.b32.xlu1 %v247_v22, %s661_s27  ;;  %v237_v43 = vmul.f32 %v596_v34, %v978_v10  ;;  %v232_v34 = vld [vmem:[%s1115_s2 + $0x58] sm:$0xff] }
  0xd7   :  { %607 = vrsqrt.f32 %v207_v35  ;;  %v250_v57 = vmul.f32 %v238_v54, %v907_v59  ;;  %v1024_v59 = vld [vmem:[%s1115_s2 + $0x50] sm:$0xff]  ;;  %s663_s2 = smov [#allocation5]  }
  0xd8   :  { %v598_v52 = vpop.eup %597  ;;  %v249_v39 = vmul.f32 %v237_v43, %v911_v3  ;;  %s562_s18 = sshll.u32 %s663_s2, 4  ;;  %s563_s18 = int_to_ptr.vmem [resolvable:$true] %s562_s18 }
  0xd9   :  { %v600_v55 = vpop.eup %599  ;;  %v240_v60 = vmul.f32 %v598_v52, %v1000_v56  ;;  %s631_s19 = scalar_lea.vmem %s563_s18, 3072  ;;  %p636_p9 = scmp.lt.s32.totalorder %s563_s18, %s563_s18 }
  0xda   :  { %275 = vrot.lane.b32.xlu1 %v248_v51, %s661_s27  ;;  %277 = vrot.lane.b32.xlu0 %v249_v39, %s661_s27  ;;  %v239_v40 = vmul.f32 %v600_v55, %v992_v50  ;;  %p632_p8 = scmp.ne.s32.totalorder %s563_s18, %s631_s19  ;;  %p637_p10 = scmp.lt.s32.totalorder %s631_s19, %s631_s19 }
  0xdb   :  { %v252_v7 = vmul.f32 %v240_v60, %v915_v23 }
  0xdc   :  { %v602_v3 = vpop.eup %601  ;;  %v251_v58 = vmul.f32 %v239_v40, %v919_v36  ;;  %p638_p11 = por %p637_p10, %p636_p9 }
  0xdd   :  { %v604_v44 = vpop.eup %603  ;;  %v242_v17 = vmul.f32 %v602_v3, %v1016_v61 }
  0xde   :  { %279 = vrot.lane.b32.xlu1 %v250_v57, %s661_s27  ;;  %281 = vrot.lane.b32.xlu0 %v251_v58, %s661_s27  ;;  %v241_v62 = vmul.f32 %v604_v44, %v1008_v48  ;;  %p639_p12 = pnand %p638_p11, %p632_p8 }
  0xdf   :  { %v254_v52 = vmul.f32 %v242_v17, %v921_v49  ;;  %v662_v49 = vmov 1  }
  0xe0   :  { %v606_v36 = vpop.eup %605  ;;  %v253_v16 = vmul.f32 %v241_v62, %v925_v53 }
  0xe1   :  { %v608_v22 = vpop.eup %607  ;;  %v244_v23 = vmul.f32 %v606_v36, %v232_v34 }
  0xe2   :  { %283 = vrot.lane.b32.xlu1 %v252_v7, %s661_s27  ;;  %285 = vrot.lane.b32.xlu0 %v253_v16, %s661_s27  ;;  %v243_v35 = vmul.f32 %v608_v22, %v1024_v59 }
  0xe3   :  { %v256_v53 = vmul.f32 %v244_v23, %v943_v11 }
  0xe4   :  { %v255_v51 = vmul.f32 %v243_v35, %v946_v29 }
  0xe6   :  { %287 = vrot.lane.b32.xlu1 %v254_v52, %s661_s27  ;;  %289 = vrot.lane.b32.xlu0 %v255_v51, %s661_s27 }
  0xea   :  { %291 = vrot.lane.b32.xlu1 %v256_v53, %s661_s27  ;;  %343 = vperm.xlu0 %581, %v952_v47  }
  0xee   :  { %348 = vperm.xlu1 %582, %v949_v37   ;;  %358 = vperm.xlu0 %581, %v236_v28  }
  0xf2   :  { %353 = vperm.xlu1 %582, %v235_v46   ;;  %368 = vperm.xlu0 %581, %v238_v54  }
  0xf6   :  { %363 = vperm.xlu1 %582, %v237_v43   ;;  %378 = vperm.xlu0 %581, %v240_v60  }
  0xfa   :  { %373 = vperm.xlu1 %582, %v239_v40   ;;  %388 = vperm.xlu0 %581, %v242_v17  }
  0xfe   :  { %383 = vperm.xlu1 %582, %v241_v62   ;;  %398 = vperm.xlu0 %581, %v244_v23  }
 0x102   :  { %393 = vperm.xlu1 %582, %v243_v35   ;;  %584 = vset.pattern.permute.xlu0 %v662_v49 }
 0x106   :  { %583 = vset.pattern.permute.xlu1 %v662_v49  ;;  %v319_v49 = vld [vmem:[#allocation2 + $0x10] sm:$0xff] }
 0x143   :  { %v272_v11 = vpop.permute.xlu1 %271 }
 0x144   :  { %v306_v29 = vsub.f32 %v932_v41, %v272_v11  ;;  %v270_v39 = vpop.permute.xlu0 %269  ;;  %v320_v11 = vld [vmem:[#allocation2 + $0x18] sm:$0xff] }
 0x145   :  { %v305_v47 = vsub.f32 %v939_v63, %v270_v39  ;;  %v317_v39 = vld [vmem:[#allocation2] sm:$0xff] }
 0x146   :  { %456 = vperm.xlu0 %584, %v306_v29  }
 0x147   :  { %451 = vperm.xlu1 %583, %v305_v47   ;;  %v318_v47 = vld [vmem:[#allocation2 + $0x8] sm:$0xff] }
 0x148   :  { %v274_v37 = vpop.permute.xlu1 %273 }
 0x149   :  { %v307_v46 = vsub.f32 %v959_v45, %v274_v37 }
 0x14b   :  { %461 = vperm.xlu1 %583, %v307_v46  }
 0x14c   :  { %v276_v28 = vpop.permute.xlu1 %275  ;;  %v278_v43 = vpop.permute.xlu0 %277 }
 0x14d   :  { %v308_v54 = vsub.f32 %v971_v42, %v276_v28  ;;  %v309_v55 = vsub.f32 %v978_v10, %v278_v43 }
 0x14f   :  { %466 = vperm.xlu1 %583, %v308_v54   ;;  %471 = vperm.xlu0 %584, %v309_v55  }
 0x150   :  { %v280_v40 = vpop.permute.xlu1 %279  ;;  %v282_v3 = vpop.permute.xlu0 %281 }
 0x151   :  { %v310_v41 = vsub.f32 %v985_v38, %v280_v40  ;;  %v311_v63 = vsub.f32 %v992_v50, %v282_v3  ;;  %v321_v40 = vld [vmem:[#allocation2 + $0x20] sm:$0xff]  ;;  %v322_v3 = vld [vmem:[#allocation2 + $0x28] sm:$0xff] }
 0x153   :  { %476 = vperm.xlu1 %583, %v310_v41   ;;  %481 = vperm.xlu0 %584, %v311_v63  }
 0x154   :  { %v284_v57 = vpop.permute.xlu1 %283  ;;  %v286_v58 = vpop.permute.xlu0 %285 }
 0x155   :  { %v312_v45 = vsub.f32 %v1000_v56, %v284_v57  ;;  %v313_v60 = vsub.f32 %v1008_v48, %v286_v58 }
 0x157   :  { %486 = vperm.xlu1 %583, %v312_v45   ;;  %491 = vperm.xlu0 %584, %v313_v60  }
 0x158   :  { %v288_v42 = vpop.permute.xlu1 %287  ;;  %v290_v10 = vpop.permute.xlu0 %289 }
 0x159   :  { %v314_v44 = vsub.f32 %v1016_v61, %v288_v42  ;;  %v315_v62 = vsub.f32 %v1024_v59, %v290_v10  ;;  %v323_v42 = vld [vmem:[#allocation2 + $0x30] sm:$0xff]  ;;  %v324_v10 = vld [vmem:[#allocation2 + $0x38] sm:$0xff] }
 0x15b   :  { %496 = vperm.xlu1 %583, %v314_v44   ;;  %501 = vperm.xlu0 %584, %v315_v62   ;;  %v325_v62 = vld [vmem:[#allocation2 + $0x40] sm:$0xff] }
 0x15c   :  { %v292_v38 = vpop.permute.xlu1 %291 }
 0x15d   :  { %v316_v50 = vsub.f32 %v232_v34, %v292_v38  ;;  %v326_v38 = vld [vmem:[#allocation2 + $0x48] sm:$0xff] }
 0x15f   :  { %506 = vperm.xlu1 %583, %v316_v50  }
 0x169   :  { %v344_v36 = vpop.permute.xlu0 %343 }
 0x16a   :  { %v401_v34 = vmul.f32 %v344_v36, %v712_v2  ;;  %v402_v23 = vmul.f32 %v344_v36, %v719_v4 }
 0x16c   :  { %v425_v43 = vadd.f32 %v401_v34, %v317_v39 }
 0x16d   :  { %v349_v7 = vpop.permute.xlu1 %348  ;;  %v359_v16 = vpop.permute.xlu0 %358 }
 0x16e   :  { %v403_v61 = vmul.f32 %v349_v7, %v736_v8  ;;  %v404_v59 = vmul.f32 %v349_v7, %v741_v9  ;;  %v426_v9 = vadd.f32 %v402_v23, %v318_v47  ;;  %v407_v57 = vmul.f32 %v359_v16, %v724_v5 }
 0x16f   :  { %v408_v58 = vmul.f32 %v359_v16, %v729_v6 }
 0x170   :  { %v427_v37 = vadd.f32 %v403_v61, %v319_v49  ;;  %v428_v46 = vadd.f32 %v404_v59, %v320_v11  ;;  %v431_v7 = vadd.f32 %v407_v57, %v323_v42  ;;  %v327_v61 = vld [vmem:[#allocation2 + $0x50] sm:$0xff]  ;;  %v328_v59 = vld [vmem:[#allocation2 + $0x58] sm:$0xff]  ;;  %v329_v49 = vld [vmem:[#allocation2 + $0x60] sm:$0xff] }
 0x171   :  { %v354_v17 = vpop.permute.xlu1 %353  ;;  %v369_v56 = vpop.permute.xlu0 %368  ;;  %v432_v16 = vadd.f32 %v408_v58, %v324_v10  ;;  %v330_v11 = vld [vmem:[#allocation2 + $0x68] sm:$0xff] }
 0x172   :  { %v405_v28 = vmul.f32 %v354_v17, %v702_v0  ;;  %v406_v8 = vmul.f32 %v354_v17, %v707_v1  ;;  %v411_v5 = vmul.f32 %v369_v56, %v750_v12  ;;  %v412_v6 = vmul.f32 %v369_v56, %v755_v13 }
 0x174   :  { %v429_v45 = vadd.f32 %v405_v28, %v321_v40  ;;  %v430_v60 = vadd.f32 %v406_v8, %v322_v3 }
 0x175   :  { %v364_v22 = vpop.permute.xlu1 %363  ;;  %v1054_v48 = vpop.permute.xlu0 %378 }
 0x176   :  { %v409_v0 = vmul.f32 %v364_v22, %v760_v14  ;;  %v410_v1 = vmul.f32 %v364_v22, %v765_v15  ;;  %v415_v56 = vmul.f32 %v1054_v48, %v774_v18 }
 0x178   :  { %v433_v17 = vadd.f32 %v409_v0, %v325_v62  ;;  %v434_v22 = vadd.f32 %v410_v1, %v326_v38  ;;  %v335_v0 = vld [vmem:[#allocation2 + $0x90] sm:$0xff]  ;;  %v336_v1 = vld [vmem:[#allocation2 + $0x98] sm:$0xff] }
 0x179   :  { %v374_v35 = vpop.permute.xlu1 %373  ;;  %v1056_v52 = vpop.permute.xlu0 %388 }
 0x17a   :  { %v413_v14 = vmul.f32 %v374_v35, %v784_v20  ;;  %v414_v15 = vmul.f32 %v374_v35, %v789_v21  ;;  %v416_v20 = vmul.f32 %v1054_v48, %v779_v19  ;;  %v435_v21 = vadd.f32 %v411_v5, %v327_v61  ;;  %v334_v19 = vld [vmem:[#allocation2 + $0x88] sm:$0xff] }
 0x17b   :  { %v436_v35 = vadd.f32 %v412_v6, %v328_v59  ;;  %v339_v6 = vld [vmem:[#allocation2 + $0xb0] sm:$0xff] }
 0x17c   :  { %v437_v28 = vadd.f32 %v413_v14, %v329_v49  ;;  %v438_v8 = vadd.f32 %v414_v15, %v330_v11 }
 0x17d   :  { %v1058_v51 = vpop.permute.xlu1 %383  ;;  %v1064_v53 = vpop.permute.xlu0 %398 }
 0x181   :  { %v1066_v29 = vpop.permute.xlu1 %393 }
 0x1c5   :  { %v457_v54 = vpop.permute.xlu0 %456 }
 0x1c6   :  { %v452_v2 = vpop.permute.xlu1 %451  ;;  %v511_v55 = vadd.f32 %v457_v54, %v427_v37  ;;  %v512_v4 = vadd.f32 %v457_v54, %v428_v46  ;;  %v417_v37 = vmul.f32 %v1058_v51, %v808_v26  ;;  %v418_v46 = vmul.f32 %v1058_v51, %v813_v27 }
 0x1c7   :  { %v509_v41 = vadd.f32 %v452_v2, %v425_v43  ;;  %v510_v63 = vadd.f32 %v452_v2, %v426_v9  ;;  %v331_v43 = vld [vmem:[#allocation2 + $0x70] sm:$0xff]  ;;  %v332_v9 = vld [vmem:[#allocation2 + $0x78] sm:$0xff]  ;;  %v333_v2 = vld [vmem:[#allocation2 + $0x80] sm:$0xff]  ;;  %v419_v26 = vmul.f32 %v1056_v52, %v798_v24  ;;  %v420_v27 = vmul.f32 %v1056_v52, %v803_v25 }
 0x1c8   :  { %535 = vst [vmem:[#allocation5 + $0x10] sm:$0xff] %v511_v55  ;;  %536 = vst [vmem:[#allocation5 + $0x18] sm:$0xff] %v512_v4  ;;  %v439_v51 = vadd.f32 %v415_v56, %v331_v43  ;;  %v440_v3 = vadd.f32 %v416_v20, %v332_v9  ;;  %v441_v57 = vadd.f32 %v417_v37, %v333_v2  ;;  %v338_v25 = vld [vmem:[#allocation2 + $0xa8] sm:$0xff] }
 0x1c9   :  { %533 = vst [vmem:[#allocation5] sm:$0xff] %v509_v41  ;;  %534 = vst [vmem:[#allocation5 + $0x8] sm:$0xff] %v510_v63  ;;  %v421_v41 = vmul.f32 %v1066_v29, %v832_v32  ;;  %v422_v63 = vmul.f32 %v1066_v29, %v837_v33  ;;  %v442_v58 = vadd.f32 %v418_v46, %v334_v19 }
 0x1ca   :  { %v462_v44 = vpop.permute.xlu1 %461  ;;  %v443_v32 = vadd.f32 %v419_v26, %v335_v0  ;;  %v444_v62 = vadd.f32 %v420_v27, %v336_v1  ;;  %v423_v33 = vmul.f32 %v1064_v53, %v822_v30  ;;  %v424_v29 = vmul.f32 %v1064_v53, %v827_v31 }
 0x1cb   :  { %v513_v50 = vadd.f32 %v462_v44, %v429_v45  ;;  %v514_v36 = vadd.f32 %v462_v44, %v430_v60  ;;  %v337_v60 = vld [vmem:[#allocation2 + $0xa0] sm:$0xff] }
 0x1cc   :  { %v445_v38 = vadd.f32 %v421_v41, %v337_v60  ;;  %v447_v30 = vadd.f32 %v423_v33, %v339_v6 }
 0x1cd   :  { %537 = vst [vmem:[#allocation5 + $0x20] sm:$0xff] %v513_v50  ;;  %538 = vst [vmem:[#allocation5 + $0x28] sm:$0xff] %v514_v36  ;;  %v446_v50 = vadd.f32 %v422_v63, %v338_v25 }
 0x1ce   :  { %v467_v34 = vpop.permute.xlu1 %466  ;;  %v472_v23 = vpop.permute.xlu0 %471 }
 0x1cf   :  { %v515_v39 = vadd.f32 %v467_v34, %v431_v7  ;;  %v516_v12 = vadd.f32 %v467_v34, %v432_v16  ;;  %v517_v47 = vadd.f32 %v472_v23, %v433_v17  ;;  %v518_v13 = vadd.f32 %v472_v23, %v434_v22  ;;  %v340_v7 = vld [vmem:[#allocation2 + $0xb8] sm:$0xff] }
 0x1d0   :  { %v448_v31 = vadd.f32 %v424_v29, %v340_v7 }
 0x1d1   :  { %539 = vst [vmem:[#allocation5 + $0x30] sm:$0xff] %v515_v39  ;;  %540 = vst [vmem:[#allocation5 + $0x38] sm:$0xff] %v516_v12 }
 0x1d2   :  { %541 = vst [vmem:[#allocation5 + $0x40] sm:$0xff] %v517_v47  ;;  %542 = vst [vmem:[#allocation5 + $0x48] sm:$0xff] %v518_v13  ;;  %v477_v18 = vpop.permute.xlu1 %476  ;;  %v482_v54 = vpop.permute.xlu0 %481 }
 0x1d3   :  { %v519_v48 = vadd.f32 %v477_v18, %v435_v21  ;;  %v520_v55 = vadd.f32 %v477_v18, %v436_v35  ;;  %v521_v4 = vadd.f32 %v482_v54, %v437_v28  ;;  %v522_v40 = vadd.f32 %v482_v54, %v438_v8 }
 0x1d5   :  { %543 = vst [vmem:[#allocation5 + $0x50] sm:$0xff] %v519_v48  ;;  %544 = vst [vmem:[#allocation5 + $0x58] sm:$0xff] %v520_v55 }
 0x1d6   :  { %545 = vst [vmem:[#allocation5 + $0x60] sm:$0xff] %v521_v4  ;;  %546 = vst [vmem:[#allocation5 + $0x68] sm:$0xff] %v522_v40  ;;  %v487_v24 = vpop.permute.xlu1 %486  ;;  %v492_v45 = vpop.permute.xlu0 %491 }
 0x1d7   :  { %v523_v52 = vadd.f32 %v487_v24, %v439_v51  ;;  %v524_v42 = vadd.f32 %v487_v24, %v440_v3  ;;  %v525_v10 = vadd.f32 %v492_v45, %v441_v57  ;;  %v526_v44 = vadd.f32 %v492_v45, %v442_v58 }
 0x1d9   :  { %547 = vst [vmem:[#allocation5 + $0x70] sm:$0xff] %v523_v52  ;;  %548 = vst [vmem:[#allocation5 + $0x78] sm:$0xff] %v524_v42 }
 0x1da   :  { %549 = vst [vmem:[#allocation5 + $0x80] sm:$0xff] %v525_v10  ;;  %550 = vst [vmem:[#allocation5 + $0x88] sm:$0xff] %v526_v44  ;;  %v497_v36 = vpop.permute.xlu1 %496  ;;  %v502_v5 = vpop.permute.xlu0 %501 }
 0x1db   :  { %v527_v16 = vadd.f32 %v497_v36, %v443_v32  ;;  %v528_v14 = vadd.f32 %v497_v36, %v444_v62  ;;  %v529_v15 = vadd.f32 %v502_v5, %v445_v38  ;;  %v530_v17 = vadd.f32 %v502_v5, %v446_v50 }
 0x1dd   :  { %551 = vst [vmem:[#allocation5 + $0x90] sm:$0xff] %v527_v16  ;;  %552 = vst [vmem:[#allocation5 + $0x98] sm:$0xff] %v528_v14 }
 0x1de   :  { %553 = vst [vmem:[#allocation5 + $0xa0] sm:$0xff] %v529_v15  ;;  %554 = vst [vmem:[#allocation5 + $0xa8] sm:$0xff] %v530_v17  ;;  %v507_v53 = vpop.permute.xlu1 %506 }
 0x1df   :  { %v531_v22 = vadd.f32 %v507_v53, %v447_v30  ;;  %v532_v61 = vadd.f32 %v507_v53, %v448_v31 }
 0x1e1   :  { %555 = vst [vmem:[#allocation5 + $0xb0] sm:$0xff] %v531_v22  ;;  %556 = vst [vmem:[#allocation5 + $0xb8] sm:$0xff] %v532_v61 }
 0x1e2   :  { %642 = shalt.err (!%p639_p12)
}
 0x1e3   :  { %s643_s21 = scalar_lea.hbm %s1116_s3, 3072 }
 0x1e4   :  { %p644_p13 = scmp.ne.s32.totalorder %s1116_s3, %s643_s21  ;;  %p647_p0 = scmp.lt.u32.totalorder %s643_s21, %s1116_s3 }
 0x1e6   :  { %p649_p1 = pnand %p647_p0, %p644_p13 }
 0x1e8   :  { %652 = shalt.err (!%p649_p1)
}
 0x1e9   :  { %568 = dma.vmem_to_hbm [thread:$0]  %s563_s18, 3072, %s1116_s3, [#allocation4], %s658_s22, %s658_s22, %s659_s23  }
 0x1ea   :  { %655 = dma.done.wait [#allocation4], 3072  }
 0x1eb   :  { %656 = vsyncadd [#allocation4], 4294964224 }
 0x1ec   :  { %572 = vsyncpa [#allocation3], 1 }
 0x1ed   :  { %573 = vsyncpa [#allocation4], 1 }

</bundles_post_ra>
